<compile_context>
chip_gen: v5e
topology: v5e:2x2
jax: 0.10.0
libtpu: 0.0.40
codegen_flags: <defaults>
</compile_context>

<pallas_src>
import functools

import jax
import jax.numpy as jnp
from jax.experimental import pallas as pl
from jax.experimental.pallas import tpu as pltpu


def _round_up(x, m):
    return ((x + m - 1) // m) * m


# ----------------------------------------------------------------------------
# im2col glue (plain JAX): (H, W, 3) -> (Ho*Wo, K_pad) bf16 patches
# ----------------------------------------------------------------------------
def im2col(x_hw_c, k=3, stride=2, k_pad=None):
    H, W, C = x_hw_c.shape
    Ho = (H - k) // stride + 1
    Wo = (W - k) // stride + 1
    cols = []
    for di in range(k):
        for dj in range(k):
            cols.append(
                x_hw_c[di:di + stride * Ho:stride,
                       dj:dj + stride * Wo:stride, :])
    p = jnp.stack(cols, axis=2).reshape(Ho * Wo, k * k * C)
    if k_pad is not None and k_pad > k * k * C:
        p = jnp.pad(p, ((0, 0), (0, k_pad - k * k * C)))
    return p.astype(jnp.bfloat16), Ho, Wo


# ----------------------------------------------------------------------------
# Fused kernel: conv-as-matmul + bias + ReLU  ->  GAP accumulator (VMEM)
#               -> FC on the last grid step   =>  (1, N_pad) logits
# ----------------------------------------------------------------------------
def fused_stem_gap_fc_kernel(p_ref, w_ref, b_ref, fcw_ref, fcb_ref,
                             o_ref, acc_ref, *, inv_p, p_valid, p_pad, tile_p):
    step = pl.program_id(0)

    @pl.when(step == 0)
    def _init():
        acc_ref[...] = jnp.zeros_like(acc_ref)

    # conv stem on the MXU (bf16 inputs, f32 accumulation) + bias + ReLU.
    h = jnp.dot(p_ref[...], w_ref[...], preferred_element_type=jnp.float32)
    h = jnp.maximum(h + b_ref[...], 0.0)

    # Mask rows padded up to the tile boundary (zero patches would otherwise
    # contribute relu(bias) to the pooled sum).  Skipped entirely when P is a
    # multiple of the tile size (static Python check).
    if p_valid != p_pad:
        rid = step * tile_p + jax.lax.broadcasted_iota(jnp.int32, (tile_p, 1), 0)
        h = jnp.where(rid < p_valid, h, 0.0)

    # Global-average-pool: accumulate the per-tile row sum (1/P folded below).
    acc_ref[...] += jnp.sum(h, axis=0, keepdims=True)

    @pl.when(step == pl.num_programs(0) - 1)
    def _finalize():
        pooled = acc_ref[...] * inv_p                          # (1, Cout_pad)
        o_ref[...] = (jnp.dot(pooled, fcw_ref[...],
                              preferred_element_type=jnp.float32)
                      + fcb_ref[...])


def stem_gap_fc(patches, w, b, fc_w, fc_b, *, p_valid, tile_p):
    p_pad, k_pad = patches.shape
    cout = w.shape[1]
    n = fc_w.shape[1]
    grid = (p_pad // tile_p,)

    kernel = functools.partial(
        fused_stem_gap_fc_kernel,
        inv_p=1.0 / float(p_valid), p_valid=p_valid, p_pad=p_pad, tile_p=tile_p)

    return pl.pallas_call(
        kernel,
        out_shape=jax.ShapeDtypeStruct((1, n), jnp.float32),
        grid_spec=pltpu.PrefetchScalarGridSpec(
            num_scalar_prefetch=0,
            grid=grid,
            in_specs=[
                pl.BlockSpec((tile_p, k_pad), lambda i: (i, 0)),  # pipelined
                pl.BlockSpec((k_pad, cout), lambda i: (0, 0)),    # resident
                pl.BlockSpec((1, cout), lambda i: (0, 0)),        # resident
                pl.BlockSpec((cout, n), lambda i: (0, 0)),        # resident
                pl.BlockSpec((1, n), lambda i: (0, 0)),           # resident
            ],
            out_specs=pl.BlockSpec((1, n), lambda i: (0, 0)),     # resident acc
            scratch_shapes=[pltpu.VMEM((1, cout), jnp.float32)],
        ),
        compiler_params=pltpu.CompilerParams(
            dimension_semantics=("arbitrary",)),   # P axis carries the GAP acc
    )(patches, w, b, fc_w, fc_b)


# ----------------------------------------------------------------------------
# Model wrapper (mirrors Model.forward, minus PIL resizing)
# ----------------------------------------------------------------------------
class PallasModel:
    def __init__(self, key, in_ch=3, stem_ch=32, num_classes=1000, k=3,
                 tile_p=256):
        self.k = k
        self.num_classes = num_classes
        self.tile_p = tile_p

        k1, k2, k3, k4 = jax.random.split(key, 4)
        mean = jnp.array([0.485, 0.456, 0.406], jnp.float32)
        std = jnp.array([0.229, 0.224, 0.225], jnp.float32)

        kk = k * k
        conv_w = 0.05 * jax.random.normal(k1, (kk * in_ch, stem_ch), jnp.float32)
        conv_b = 0.01 * jax.random.normal(k2, (stem_ch,), jnp.float32)
        fc_w = 0.05 * jax.random.normal(k3, (stem_ch, num_classes), jnp.float32)
        fc_b = 0.01 * jax.random.normal(k4, (num_classes,), jnp.float32)

        # Fold the normalization (x - mean)/std exactly into the conv weights:
        #   w'[t*C+c, o] = w[t*C+c, o] / std[c]
        #   b'[o]       = b[o] - sum_{t,c} w[t*C+c, o] * mean[c] / std[c]
        w3 = conv_w.reshape(kk, in_ch, stem_ch)
        w_folded = (w3 / std[None, :, None]).reshape(kk * in_ch, stem_ch)
        b_folded = conv_b - jnp.sum(w3 * (mean / std)[None, :, None],
                                    axis=(0, 1))

        # Padded, aligned layouts.
        self.K_pad = _round_up(kk * in_ch, 8)        # 27 -> 32
        self.Cout_pad = _round_up(stem_ch, 128)      # 32 -> 128
        self.N_pad = _round_up(num_classes, 128)     # 1000 -> 1024

        self.conv_w = jnp.pad(
            w_folded, ((0, self.K_pad - kk * in_ch),
                       (0, self.Cout_pad - stem_ch))).astype(jnp.bfloat16)
        self.conv_b = jnp.pad(
            b_folded[None, :],
            ((0, 0), (0, self.Cout_pad - stem_ch))).astype(jnp.float32)
        self.fc_w = jnp.pad(
            fc_w, ((0, self.Cout_pad - stem_ch),
                   (0, self.N_pad - num_classes))).astype(jnp.float32)
        self.fc_b = jnp.pad(
            fc_b[None, :],
            ((0, 0), (0, self.N_pad - num_classes))).astype(jnp.float32)

    def forward(self, image_hw3_01):
        # image_hw3_01: (H, W, 3) float in [0, 1]   (== np.array(image)/255.)
        patches, Ho, Wo = im2col(image_hw3_01, k=self.k, stride=2,
                                 k_pad=self.K_pad)
        p_valid = Ho * Wo
        tile_p = min(self.tile_p, _round_up(p_valid, 8))
        p_pad = _round_up(p_valid, tile_p)
        if p_pad != p_valid:
            patches = jnp.pad(patches, ((0, p_pad - p_valid), (0, 0)))

        logits = stem_gap_fc(patches, self.conv_w, self.conv_b,
                             self.fc_w, self.fc_b,
                             p_valid=p_valid, tile_p=tile_p)
        return logits[:, :self.num_classes]          # (1, num_classes)


if __name__ == "__main__":
    key = jax.random.PRNGKey(0)
    k_img, k_model = jax.random.split(key)

    # Small synthetic "already resized" image: (H, W, 3) values in [0, 1].
    # H = W = 65 -> 32x32 conv output grid -> P = 1024 = 4 tiles of 256.
    H, W = 65, 65
    image = jax.random.uniform(k_img, (H, W, 3), jnp.float32)

    model = PallasModel(k_model)
    out = model.forward(image)
    out = jax.block_until_ready(out)

    assert out.shape == (1, 1000)
    assert bool(jnp.all(jnp.isfinite(out)))
    print("KERNEL_OK")
</pallas_src>

<mosaic_0001>
module attributes {stable_mosaic.version = 11 : i64} {
  func.func @fused_stem_gap_fc_kernel(%arg0: i32, %arg1: memref<256x32xbf16, #tpu.memory_space<vmem>>, %arg2: memref<32x128xbf16, #tpu.memory_space<vmem>>, %arg3: memref<1x128xf32, #tpu.memory_space<vmem>>, %arg4: memref<128x1024xf32, #tpu.memory_space<vmem>>, %arg5: memref<1x1024xf32, #tpu.memory_space<vmem>>, %arg6: memref<1x1024xf32, #tpu.memory_space<vmem>>, %arg7: memref<1x128xf32, #tpu.memory_space<vmem>>) attributes {dimension_semantics = [#tpu.dimension_semantics<arbitrary>], iteration_bounds = array<i64: 4>, scalar_prefetch = 0 : i64, scratch_operands = 1 : i64, tpu.core_type = #tpu.core_type<tc>, window_params = [{transform_indices = @transform_0, window_bounds = array<i64: 256, 32>}, {pipeline_mode = #tpu.pipeline_mode<synchronous>, transform_indices = @transform_1, window_bounds = array<i64: 32, 128>}, {pipeline_mode = #tpu.pipeline_mode<synchronous>, transform_indices = @transform_2, window_bounds = array<i64: 1, 128>}, {pipeline_mode = #tpu.pipeline_mode<synchronous>, transform_indices = @transform_3, window_bounds = array<i64: 128, 1024>}, {pipeline_mode = #tpu.pipeline_mode<synchronous>, transform_indices = @transform_4, window_bounds = array<i64: 1, 1024>}, {pipeline_mode = #tpu.pipeline_mode<synchronous>, transform_indices = @transform_5, window_bounds = array<i64: 1, 1024>}]} {
    %c0_i32 = arith.constant 0 : i32
    %0 = arith.cmpi eq, %arg0, %c0_i32 : i32
    %1 = arith.extui %0 : i1 to i32
    %c0_i32_0 = arith.constant 0 : i32
    %2 = arith.cmpi ne, %1, %c0_i32_0 : i32
    scf.if %2 {
      %cst_13 = arith.constant 0.000000e+00 : f32
      %19 = vector.broadcast %cst_13 : f32 to vector<1x128xf32>
      %c0_14 = arith.constant 0 : index
      %c0_15 = arith.constant 0 : index
      %20 = vector.load %arg7[%c0_14, %c0_15] : memref<1x128xf32, #tpu.memory_space<vmem>>, vector<1x128xf32>
      tpu.vector_store %arg7[%c0_14, %c0_15], %19 {strides = array<i32>} : memref<1x128xf32, #tpu.memory_space<vmem>>, vector<1x128xf32>,
    } else {
    }
    %c0 = arith.constant 0 : index
    %c0_1 = arith.constant 0 : index
    %3 = vector.load %arg1[%c0, %c0_1] : memref<256x32xbf16, #tpu.memory_space<vmem>>, vector<256x32xbf16>
    %c0_2 = arith.constant 0 : index
    %c0_3 = arith.constant 0 : index
    %4 = vector.load %arg2[%c0_2, %c0_3] : memref<32x128xbf16, #tpu.memory_space<vmem>>, vector<32x128xbf16>
    %cst = arith.constant dense<0.000000e+00> : vector<256x128xf32>
    %5 = tpu.matmul %3, %4, %cst {dimension_numbers = #tpu.dot_dimension_numbers<[1], [0], [0], [1], [0, 0, 1, 1], [], []>} : vector<256x32xbf16>, vector<32x128xbf16>, vector<256x128xf32> -> vector<256x128xf32>
    %c0_4 = arith.constant 0 : index
    %c0_5 = arith.constant 0 : index
    %6 = vector.load %arg3[%c0_4, %c0_5] : memref<1x128xf32, #tpu.memory_space<vmem>>, vector<1x128xf32>
    %7 = vector.broadcast %6 : vector<1x128xf32> to vector<256x128xf32>
    %8 = arith.addf %5, %7 : vector<256x128xf32>
    %cst_6 = arith.constant 0.000000e+00 : f32
    %9 = vector.broadcast %cst_6 : f32 to vector<256x128xf32>
    %10 = arith.maximumf %8, %9 : vector<256x128xf32>
    %c0_7 = arith.constant 0 : index
    %c0_8 = arith.constant 0 : index
    %11 = vector.load %arg7[%c0_7, %c0_8] : memref<1x128xf32, #tpu.memory_space<vmem>>, vector<1x128xf32>
    %cst_9 = arith.constant dense<0.000000e+00> : vector<128xf32>
    %12 = vector.multi_reduction <add>, %10, %cst_9 [0] : vector<256x128xf32> to vector<128xf32>
    %13 = vector.shape_cast %12 : vector<128xf32> to vector<1x128xf32>
    %14 = arith.addf %11, %13 : vector<1x128xf32>
    %c0_10 = arith.constant 0 : index
    %c0_11 = arith.constant 0 : index
    %15 = vector.load %arg7[%c0_10, %c0_11] : memref<1x128xf32, #tpu.memory_space<vmem>>, vector<1x128xf32>
    tpu.vector_store %arg7[%c0_10, %c0_11], %14 {strides = array<i32>} : memref<1x128xf32, #tpu.memory_space<vmem>>, vector<1x128xf32>,
    %c3_i32 = arith.constant 3 : i32
    %16 = arith.cmpi eq, %arg0, %c3_i32 : i32
    %17 = arith.extui %16 : i1 to i32
    %c0_i32_12 = arith.constant 0 : i32
    %18 = arith.cmpi ne, %17, %c0_i32_12 : i32
    scf.if %18 {
      %c0_13 = arith.constant 0 : index
      %c0_14 = arith.constant 0 : index
      %19 = vector.load %arg7[%c0_13, %c0_14] : memref<1x128xf32, #tpu.memory_space<vmem>>, vector<1x128xf32>
      %cst_15 = arith.constant 9.765625E-4 : f32
      %20 = vector.broadcast %cst_15 : f32 to vector<1x128xf32>
      %21 = arith.mulf %19, %20 : vector<1x128xf32>
      %c0_16 = arith.constant 0 : index
      %c0_17 = arith.constant 0 : index
      %22 = vector.load %arg4[%c0_16, %c0_17] : memref<128x1024xf32, #tpu.memory_space<vmem>>, vector<128x1024xf32>
      %cst_18 = arith.constant dense<0.000000e+00> : vector<1x1024xf32>
      %23 = tpu.matmul %21, %22, %cst_18 {dimension_numbers = #tpu.dot_dimension_numbers<[1], [0], [0], [1], [0, 0, 1, 1], [], []>} : vector<1x128xf32>, vector<128x1024xf32>, vector<1x1024xf32> -> vector<1x1024xf32>
      %c0_19 = arith.constant 0 : index
      %c0_20 = arith.constant 0 : index
      %24 = vector.load %arg5[%c0_19, %c0_20] : memref<1x1024xf32, #tpu.memory_space<vmem>>, vector<1x1024xf32>
      %25 = arith.addf %23, %24 : vector<1x1024xf32>
      %c0_21 = arith.constant 0 : index
      %c0_22 = arith.constant 0 : index
      %26 = vector.load %arg6[%c0_21, %c0_22] : memref<1x1024xf32, #tpu.memory_space<vmem>>, vector<1x1024xf32>
      tpu.vector_store %arg6[%c0_21, %c0_22], %25 {strides = array<i32>} : memref<1x1024xf32, #tpu.memory_space<vmem>>, vector<1x1024xf32>,
    } else {
    }
    return
  }
  func.func @transform_0(%arg0: i32) -> (i32, i32) {
    %c0_i32 = arith.constant 0 : i32
    %c0_i32_0 = arith.constant 0 : i32
    return %arg0, %c0_i32 : i32, i32
  }
  func.func @transform_1(%arg0: i32) -> (i32, i32) {
    %c0_i32 = arith.constant 0 : i32
    %c0_i32_0 = arith.constant 0 : i32
    %c0_i32_1 = arith.constant 0 : i32
    return %c0_i32, %c0_i32_0 : i32, i32
  }
  func.func @transform_2(%arg0: i32) -> (i32, i32) {
    %c0_i32 = arith.constant 0 : i32
    %c0_i32_0 = arith.constant 0 : i32
    %c0_i32_1 = arith.constant 0 : i32
    return %c0_i32, %c0_i32_0 : i32, i32
  }
  func.func @transform_3(%arg0: i32) -> (i32, i32) {
    %c0_i32 = arith.constant 0 : i32
    %c0_i32_0 = arith.constant 0 : i32
    %c0_i32_1 = arith.constant 0 : i32
    return %c0_i32, %c0_i32_0 : i32, i32
  }
  func.func @transform_4(%arg0: i32) -> (i32, i32) {
    %c0_i32 = arith.constant 0 : i32
    %c0_i32_0 = arith.constant 0 : i32
    %c0_i32_1 = arith.constant 0 : i32
    return %c0_i32, %c0_i32_0 : i32, i32
  }
  func.func @transform_5(%arg0: i32) -> (i32, i32) {
    %c0_i32 = arith.constant 0 : i32
    %c0_i32_0 = arith.constant 0 : i32
    %c0_i32_1 = arith.constant 0 : i32
    return %c0_i32, %c0_i32_0 : i32, i32
  }
}

</mosaic_0001>

<bundles_post_ra>
// kernel: tpu_custom_call.1
= control target key start
LH: loop header
LB: loop body
LE: loop exit
PB: predicated region body
PF: predicated region fallthrough
CT: control target
= control target key end

     0   :  { %10 = vsyncpa [#allocation4], 0  ;;  %s1383_s0 = inlined_call_operand.vmem [shape: bf16[1024,32], index: 0, kind: input, shape index: {}]   ;;  %s1384_s1 = inlined_call_operand.vmem [shape: bf16[32,128], index: 1, kind: input, shape index: {}]   ;;  %s1385_s2 = inlined_call_operand.vmem [shape: f32[1,128], index: 2, kind: input, shape index: {}]   ;;  %s1386_s3 = inlined_call_operand.hbm [shape: f32[128,1024], index: 3, kind: input, shape index: {}]   ;;  %s1387_s4 = inlined_call_operand.vmem [shape: f32[1,1024], index: 4, kind: input, shape index: {}]   ;;  %s1388_s5 = inlined_call_operand.hbm [shape: f32[1,1024], index: 5, kind: output, shape index: {}]  }
   0x1   :  { %11 = vsyncpa [#allocation5], 0  ;;  %s1246_s18 = smov 0  }
   0x2 LB: > { %s170_s21 = sshll.u32 %s1386_s3, 4  ;;  %s1255_s22 = sadd.s32 4294967295, %s1209_s18   ;;  %s1209_s18 = sphi %s1246_s18, %s17_s18   ;;  %s171_s21 = int_to_ptr.hbm [resolvable:$true] %s170_s21 }
   0x3   : > { %p982_p0 = scmp.ge.s32.totalorder %s1209_s18, 1  ;;  %p153_p1 = scmp.lt.s32.totalorder %s1209_s18, 5 }
   0x4   : > { %p983_p2 = scmp.ne.s32.totalorder %s1255_s22, 0  ;;  %p1119_p3 = scmp.eq.s32.totalorder %s1255_s22, 0 }
   0x5   : > { %p154_p4 = pnand %p982_p0, %p153_p1  ;;  %s1211_s23 = smov [#allocation3]  }
   0x6   : > { %s172_s24 = sshll.u32 %s1211_s23, 4  ;;  %s1212_s25 = smov 1024   ;;  %s173_s24 = int_to_ptr.vmem [resolvable:$true] %s172_s24 }
   0x7   : > { %p1115_p5 = pneg %p154_p4  ;;  %s1213_s26 = smov 64  }
   0x8   : > { %200 = sbr.rel (%p154_p4) target bundleno = 491 (0x1eb), region = 40 }
   0x9   : > { %p1116_p6 = pnand %p1119_p3, %p1115_p5 }
   0xb   : > { %1118 = dma.hbm_to_vmem [thread:$0]  (!%p1116_p6), %s171_s21, 16384, %s173_s24, [#allocation4], %s1212_s25, %s1212_s25, %s1213_s26  }
   0xd   : > { %1200 = dma.done.wait (%p1119_p3), [#allocation4], 16384  }
   0xe   : > { %1202 = vsyncadd (%p1119_p3), [#allocation4], 4294950912  ;;  %s987_s27 = sshll.u32 %s1255_s22, 5 }
   0xf   : > { %p225_p7 = scmp.lt.s32.totalorder %s987_s27, 127  ;;  %234 = sbr.rel (%p983_p2) target bundleno = 22 (0x16), region = 48 }
  0x11   : > { %s1390_s27 = smov (!%p225_p7, %s987_s27), 127 }
  0x12   : > { %s988_s28 = sshll.u32 %s1390_s27, 2 }
  0x13   : > { %s1265_s6 = scalar_lea.vmem %s1383_s0, %s988_s28 }
  0x14   : > { %v1214_v0 = vmov 0.0  }
  0x15   : > { %235 = vst [vmem:[#allocation2] sm:$0x1] %v1214_v0 }
  0x16 PF: > { %v1100_v1 = vld [vmem:[%s1384_s1 + $0x8] sm:$0xff]  ;;  %v1099_v2 = vld [vmem:[%s1384_s1] sm:$0xff]  ;;  %vm368_vm0 = vcmask 261120   ;;  %v1085_v11 = vld [vmem:[%s1265_s6 + $0x10] sm:$0xff]  ;;  %p1078_p8 = scmp.ne.s32.totalorder %s1255_s22, 3 }
  0x17   : > { %423 = vmatpush.bf16.msra.mxu0 %v1100_v1  ;;  %1101 = vmatpush.bf16.msra.mxu1 %v1100_v1  ;;  %v1083_v3 = vld [vmem:[%s1265_s6] sm:$0xff]  ;;  %v1084_v7 = vld [vmem:[%s1265_s6 + $0x8] sm:$0xff]  ;;  %v1089_v12 = vld [vmem:[%s1265_s6 + $0x30] sm:$0xff] }
  0x18   : > { %1102 = vmatpush.bf16.msra.mxu2 %v1100_v1  ;;  %1103 = vmatpush.bf16.msra.mxu3 %v1100_v1  ;;  %v1087_v4 = vld [vmem:[%s1265_s6 + $0x20] sm:$0xff]  ;;  %v1088_v8 = vld [vmem:[%s1265_s6 + $0x28] sm:$0xff]  ;;  %v1093_v13 = vld [vmem:[%s1265_s6 + $0x50] sm:$0xff] }
  0x19   : > { %v1091_v5 = vld [vmem:[%s1265_s6 + $0x40] sm:$0xff]  ;;  %v1092_v9 = vld [vmem:[%s1265_s6 + $0x48] sm:$0xff]  ;;  %v1097_v14 = vld [vmem:[%s1265_s6 + $0x70] sm:$0xff] }
  0x1a   : > { %v1095_v6 = vld [vmem:[%s1265_s6 + $0x60] sm:$0xff]  ;;  %v1096_v10 = vld [vmem:[%s1265_s6 + $0x68] sm:$0xff]  ;;  %v1086_v15 = vld [vmem:[%s1265_s6 + $0x18] sm:$0xff] }
  0x1b   : > { %424 = vmatpush.bf16.msra.mxu0 %v1099_v2  ;;  %1104 = vmatpush.bf16.msra.mxu1 %v1099_v2  ;;  %v1090_v16 = vld [vmem:[%s1265_s6 + $0x38] sm:$0xff]  ;;  %v1318_v33 = vld [vmem:[%s1385_s2] ss:$0 sm:$0xff] }
  0x1c   : > { %1105 = vmatpush.bf16.msra.mxu2 %v1099_v2  ;;  %1106 = vmatpush.bf16.msra.mxu3 %v1099_v2  ;;  %v1094_v17 = vld [vmem:[%s1265_s6 + $0x58] sm:$0xff] }
  0x1d   : > { %v1098_v18 = vld [vmem:[%s1265_s6 + $0x78] sm:$0xff] }
  0x1e   : > { %1062 = vmatmul.msk.bf16.vlgmr.msra.gmra.mxu0 %vm368_vm0, %v1083_v3  ;;  %1066 = vmatmul.msk.bf16.vlgmr.msra.gmra.mxu1 %vm368_vm0, %v1087_v4 }
  0x1f   : > { %1070 = vmatmul.msk.bf16.vlgmr.msra.gmra.mxu2 %vm368_vm0, %v1091_v5  ;;  %1074 = vmatmul.msk.bf16.vlgmr.msra.gmra.mxu3 %vm368_vm0, %v1095_v6 }
  0x2e   : > { %1063 = vmatmul.msk.bf16.gmra.mxu0 %vm368_vm0, %v1084_v7  ;;  %1067 = vmatmul.msk.bf16.gmra.mxu1 %vm368_vm0, %v1088_v8 }
  0x2f   : > { %1071 = vmatmul.msk.bf16.gmra.mxu2 %vm368_vm0, %v1092_v9  ;;  %1075 = vmatmul.msk.bf16.gmra.mxu3 %vm368_vm0, %v1096_v10 }
  0x3e   : > { %1064 = vmatmul.msk.bf16.gmra.mxu0 %vm368_vm0, %v1085_v11  ;;  %1068 = vmatmul.msk.bf16.gmra.mxu1 %vm368_vm0, %v1089_v12 }
  0x3f   : > { %1072 = vmatmul.msk.bf16.gmra.mxu2 %vm368_vm0, %v1093_v13  ;;  %1076 = vmatmul.msk.bf16.gmra.mxu3 %vm368_vm0, %v1097_v14 }
  0x4e   : > { %1065 = vmatmul.msk.bf16.gmra.mxu0 %vm368_vm0, %v1086_v15  ;;  %1069 = vmatmul.msk.bf16.gmra.mxu1 %vm368_vm0, %v1090_v16 }
  0x4f   : > { %1073 = vmatmul.msk.bf16.gmra.mxu2 %vm368_vm0, %v1094_v17  ;;  %1077 = vmatmul.msk.bf16.gmra.mxu3 %vm368_vm0, %v1098_v18 }
  0x9b   : > { %v426_v19 = vpop.f32.mrf.mxu0  ;;  %v446_v20 = vpop.f32.mrf.mxu1 }
  0x9c   : > { %v427_v37 = vadd.f32 %v1318_v33, %v426_v19  ;;  %v447_v60 = vadd.f32 %v1318_v33, %v446_v20 }
  0x9e   : > { %v506_v42 = vmax.f32 %v427_v37, 0.0  ;;  %v514_v4 = vmax.f32 %v447_v60, 0.0 }
  0xa2   : > { %v1307_v23 = vpop.f32.mrf.mxu2  ;;  %v1311_v29 = vpop.f32.mrf.mxu3 }
  0xa3   : > { %v428_v21 = vpop.f32.mrf.mxu0  ;;  %v448_v22 = vpop.f32.mrf.mxu1 }
  0xa4   : > { %v429_v36 = vadd.f32 %v1318_v33, %v428_v21  ;;  %v449_v0 = vadd.f32 %v1318_v33, %v448_v22 }
  0xa6   : > { %v507_v40 = vmax.f32 %v429_v36, 0.0  ;;  %v515_v7 = vmax.f32 %v449_v0, 0.0 }
  0xa8   : > { %v539_v47 = vadd.f32 %v507_v40, %v506_v42 }
  0xaa   : > { %v1309_v27 = vpop.f32.mrf.mxu2  ;;  %v1320_v35 = vpop.f32.mrf.mxu3 }
  0xab   : > { %v431_v24 = vpop.f32.mrf.mxu0  ;;  %v451_v25 = vpop.f32.mrf.mxu1  ;;  %v489_v60 = vadd.f32 %v1318_v33, %v1320_v35 }
  0xac   : > { %v432_v38 = vadd.f32 %v1318_v33, %v431_v24  ;;  %v452_v5 = vadd.f32 %v1318_v33, %v451_v25 }
  0xae   : > { %v508_v43 = vmax.f32 %v432_v38, 0.0  ;;  %v516_v11 = vmax.f32 %v452_v5, 0.0 }
  0xb0   : > { %v540_v51 = vadd.f32 %v539_v47, %v508_v43 }
  0xb2   : > { %v1313_v31 = vpop.f32.mrf.mxu2  ;;  %v1328_v50 = vpop.f32.mrf.mxu3 }
  0xb3   : > { %v433_v26 = vpop.f32.mrf.mxu0  ;;  %v453_v28 = vpop.f32.mrf.mxu1  ;;  %v472_v40 = vadd.f32 %v1318_v33, %v1313_v31  ;;  %v492_v0 = vadd.f32 %v1318_v33, %v1328_v50 }
  0xb4   : > { %v434_v41 = vadd.f32 %v1318_v33, %v433_v26  ;;  %v454_v8 = vadd.f32 %v1318_v33, %v453_v28  ;;  %v467_v26 = vadd.f32 %v1318_v33, %v1307_v23 }
  0xb6   : > { %v509_v48 = vmax.f32 %v434_v41, 0.0  ;;  %v517_v14 = vmax.f32 %v454_v8, 0.0  ;;  %v522_v38 = vmax.f32 %v467_v26, 0.0  ;;  %v538_v26 = vld [vmem:[#allocation2] sm:$0x1] }
  0xb8   : > { %v541_v54 = vadd.f32 %v540_v51, %v509_v48 }
  0xba   : > { %v473_v39 = vpop.f32.mrf.mxu2  ;;  %v493_v3 = vpop.f32.mrf.mxu3 }
  0xbb   : > { %v436_v30 = vpop.f32.mrf.mxu0  ;;  %v456_v32 = vpop.f32.mrf.mxu1  ;;  %v474_v43 = vadd.f32 %v1318_v33, %v473_v39  ;;  %v487_v39 = vadd.f32 %v1318_v33, %v1311_v29 }
  0xbc   : > { %v437_v44 = vadd.f32 %v1318_v33, %v436_v30  ;;  %v457_v12 = vadd.f32 %v1318_v33, %v456_v32 }
  0xbd   : > { %v525_v48 = vmax.f32 %v474_v43, 0.0 }
  0xbe   : > { %v510_v52 = vmax.f32 %v437_v44, 0.0  ;;  %v518_v18 = vmax.f32 %v457_v12, 0.0 }
  0xc0   : > { %v542_v57 = vadd.f32 %v541_v54, %v510_v52 }
  0xc2   : > { %v476_v56 = vpop.f32.mrf.mxu2  ;;  %v496_v21 = vpop.f32.mrf.mxu3 }
  0xc3   : > { %v438_v34 = vpop.f32.mrf.mxu0  ;;  %v458_v46 = vpop.f32.mrf.mxu1  ;;  %v477_v23 = vadd.f32 %v1318_v33, %v476_v56  ;;  %v497_v29 = vadd.f32 %v1318_v33, %v496_v21 }
  0xc4   : > { %v439_v49 = vadd.f32 %v1318_v33, %v438_v34  ;;  %v459_v15 = vadd.f32 %v1318_v33, %v458_v46  ;;  %v469_v34 = vadd.f32 %v1318_v33, %v1309_v27  ;;  %v524_v46 = vmax.f32 %v472_v40, 0.0 }
  0xc5   : > { %v526_v52 = vmax.f32 %v477_v23, 0.0 }
  0xc6   : > { %v511_v55 = vmax.f32 %v439_v49, 0.0  ;;  %v519_v22 = vmax.f32 %v459_v15, 0.0  ;;  %v523_v42 = vmax.f32 %v469_v34, 0.0 }
  0xc8   : > { %v543_v61 = vadd.f32 %v542_v57, %v511_v55 }
  0xca   : > { %v478_v10 = vpop.f32.mrf.mxu2 }
  0xcb   : > { %v441_v45 = vpop.f32.mrf.mxu0  ;;  %v461_v63 = vpop.f32.mrf.mxu1  ;;  %v479_v49 = vadd.f32 %v1318_v33, %v478_v10 }
  0xcc   : > { %v442_v53 = vadd.f32 %v1318_v33, %v441_v45  ;;  %v462_v19 = vadd.f32 %v1318_v33, %v461_v63  ;;  %v498_v45 = vpop.f32.mrf.mxu3  ;;  %v530_v63 = vmax.f32 %v487_v39, 0.0 }
  0xcd   : > { %v527_v31 = vmax.f32 %v479_v49, 0.0 }
  0xce   : > { %v512_v58 = vmax.f32 %v442_v53, 0.0  ;;  %v520_v28 = vmax.f32 %v462_v19, 0.0 }
  0xd0   : > { %v544_v1 = vadd.f32 %v543_v61, %v512_v58 }
  0xd2   : > { %v481_v32 = vpop.f32.mrf.mxu2 }
  0xd3   : > { %v443_v59 = vpop.f32.mrf.mxu0  ;;  %v463_v17 = vpop.f32.mrf.mxu1  ;;  %v482_v54 = vadd.f32 %v1318_v33, %v481_v32 }
  0xd4   : > { %v444_v62 = vadd.f32 %v1318_v33, %v443_v59  ;;  %v464_v25 = vadd.f32 %v1318_v33, %v463_v17  ;;  %v501_v56 = vpop.f32.mrf.mxu3 }
  0xd5   : > { %v528_v59 = vmax.f32 %v482_v54, 0.0 }
  0xd6   : > { %v513_v2 = vmax.f32 %v444_v62, 0.0  ;;  %v521_v37 = vmax.f32 %v464_v25, 0.0 }
  0xd8   : > { %v545_v6 = vadd.f32 %v544_v1, %v513_v2  ;;  %v531_v2 = vmax.f32 %v489_v60, 0.0 }
  0xda   : > { %v546_v9 = vadd.f32 %v545_v6, %v514_v4  ;;  %v483_v51 = vpop.f32.mrf.mxu2  ;;  %v494_v4 = vadd.f32 %v1318_v33, %v493_v3  ;;  %v532_v6 = vmax.f32 %v492_v0, 0.0 }
  0xdb   : > { %v484_v57 = vadd.f32 %v1318_v33, %v483_v51 }
  0xdc   : > { %v547_v13 = vadd.f32 %v546_v9, %v515_v7  ;;  %v533_v8 = vmax.f32 %v494_v4, 0.0  ;;  %v499_v9 = vadd.f32 %v1318_v33, %v498_v45  ;;  %v503_v35 = vpop.f32.mrf.mxu3 }
  0xdd   : > { %v529_v62 = vmax.f32 %v484_v57, 0.0  ;;  %v504_v15 = vadd.f32 %v1318_v33, %v503_v35 }
  0xde   : > { %v548_v16 = vadd.f32 %v547_v13, %v516_v11  ;;  %v534_v11 = vmax.f32 %v497_v29, 0.0  ;;  %v502_v13 = vadd.f32 %v1318_v33, %v501_v56 }
  0xe0   : > { %v549_v20 = vadd.f32 %v548_v16, %v517_v14  ;;  %v535_v14 = vmax.f32 %v499_v9, 0.0  ;;  %v536_v3 = vmax.f32 %v502_v13, 0.0 }
  0xe2   : > { %v550_v24 = vadd.f32 %v549_v20, %v518_v18  ;;  %v537_v18 = vmax.f32 %v504_v15, 0.0 }
  0xe4   : > { %v551_v30 = vadd.f32 %v550_v24, %v519_v22 }
  0xe6   : > { %v552_v36 = vadd.f32 %v551_v30, %v520_v28 }
  0xe8   : > { %v553_v41 = vadd.f32 %v552_v36, %v521_v37 }
  0xea   : > { %v554_v44 = vadd.f32 %v553_v41, %v522_v38 }
  0xec   : > { %v555_v47 = vadd.f32 %v554_v44, %v523_v42 }
  0xee   : > { %v556_v27 = vadd.f32 %v555_v47, %v524_v46 }
  0xf0   : > { %v557_v53 = vadd.f32 %v556_v27, %v525_v48 }
  0xf2   : > { %v558_v55 = vadd.f32 %v557_v53, %v526_v52 }
  0xf4   : > { %v559_v58 = vadd.f32 %v558_v55, %v527_v31 }
  0xf6   : > { %v560_v61 = vadd.f32 %v559_v58, %v528_v59 }
  0xf8   : > { %v561_v1 = vadd.f32 %v560_v61, %v529_v62 }
  0xfa   : > { %v562_v5 = vadd.f32 %v561_v1, %v530_v63 }
  0xfc   : > { %v563_v7 = vadd.f32 %v562_v5, %v531_v2 }
  0xfe   : > { %v564_v10 = vadd.f32 %v563_v7, %v532_v6 }
 0x100   : > { %v565_v12 = vadd.f32 %v564_v10, %v533_v8 }
 0x102   : > { %v566_v50 = vadd.f32 %v565_v12, %v534_v11 }
 0x104   : > { %v567_v16 = vadd.f32 %v566_v50, %v535_v14 }
 0x106   : > { %v568_v17 = vadd.f32 %v567_v16, %v536_v3 }
 0x108   : > { %v569_v19 = vadd.f32 %v568_v17, %v537_v18 }
 0x10a   : > { %v570_v20 = vrot.slane %v569_v19, 4 }
 0x10c   : > { %v571_v21 = vadd.f32 %v570_v20, %v569_v19 }
 0x10e   : > { %v572_v22 = vrot.slane %v571_v21, 2 }
 0x110   : > { %v573_v24 = vadd.f32 %v572_v22, %v571_v21 }
 0x112   : > { %v574_v25 = vrot.slane %v573_v24, 1 }
 0x114   : > { %v575_v28 = vadd.f32 %v574_v25, %v573_v24  ;;  %581 = sbr.rel (%p1078_p8) target bundleno = 486 (0x1e6), region = 52 }
 0x116   : > { %v576_v30 = vadd.f32 %v575_v28, %v538_v26 }
 0x118   : > { %577 = vst [vmem:[#allocation2] sm:$0x1] %v576_v30 }
 0x119   : > { %v706_v32 = vld [vmem:[#allocation3 + $0x3d0] sm:$0xff]  ;;  %v707_v34 = vld [vmem:[#allocation3 + $0x3d8] sm:$0xff]  ;;  %v704_v40 = vld [vmem:[#allocation3 + $0x3c0] sm:$0xff]  ;;  %vm907_vm1 = vcmask 1042434   ;;  %vm905_vm2 = vcmask 1040384   ;;  %vm909_vm3 = vcmask 1041408  }
 0x11a   : > { %v698_v33 = vld [vmem:[#allocation3 + $0x390] sm:$0xff]  ;;  %770 = vmatpush.msra.mxu2 %v706_v32  ;;  %790 = vmatpush.msra.mxu3 %v707_v34  ;;  %v699_v36 = vld [vmem:[#allocation3 + $0x398] sm:$0xff]  ;;  %v705_v41 = vld [vmem:[#allocation3 + $0x3c8] sm:$0xff]  ;;  %vm911_vm4 = vcmask 1044484   ;;  %vm913_vm5 = vcmask 1046534   ;;  %vm915_vm6 = vcmask 1045508  }
 0x11b   : > { %v690_v37 = vld [vmem:[#allocation3 + $0x350] sm:$0xff]  ;;  %v691_v38 = vld [vmem:[#allocation3 + $0x358] sm:$0xff]  ;;  %v696_v42 = vld [vmem:[#allocation3 + $0x380] sm:$0xff]  ;;  %730 = vmatpush.msra.mxu0 %v704_v40  ;;  %750 = vmatpush.msra.mxu1 %v705_v41  ;;  %vm917_vm7 = vcmask 1043456  }
 0x11c   : > { %771 = vmatpush.msra.mxu2 %v698_v33  ;;  %791 = vmatpush.msra.mxu3 %v699_v36  ;;  %v697_v43 = vld [vmem:[#allocation3 + $0x388] sm:$0xff]  ;;  %v682_v44 = vld [vmem:[#allocation3 + $0x310] sm:$0xff]  ;;  %v683_v45 = vld [vmem:[#allocation3 + $0x318] sm:$0xff] }
 0x11d   : > { %v688_v46 = vld [vmem:[#allocation3 + $0x340] sm:$0xff]  ;;  %v689_v23 = vld [vmem:[#allocation3 + $0x348] sm:$0xff]  ;;  %731 = vmatpush.msra.mxu0 %v696_v42  ;;  %751 = vmatpush.msra.mxu1 %v697_v43  ;;  %v674_v47 = vld [vmem:[#allocation3 + $0x2d0] sm:$0xff] }
 0x11e   : > { %772 = vmatpush.msra.mxu2 %v690_v37  ;;  %792 = vmatpush.msra.mxu3 %v691_v38  ;;  %v675_v48 = vld [vmem:[#allocation3 + $0x2d8] sm:$0xff]  ;;  %v680_v49 = vld [vmem:[#allocation3 + $0x300] sm:$0xff]  ;;  %v681_v27 = vld [vmem:[#allocation3 + $0x308] sm:$0xff] }
 0x11f   : > { %732 = vmatpush.msra.mxu0 %v688_v46  ;;  %752 = vmatpush.msra.mxu1 %v689_v23  ;;  %v666_v51 = vld [vmem:[#allocation3 + $0x290] sm:$0xff]  ;;  %v667_v52 = vld [vmem:[#allocation3 + $0x298] sm:$0xff]  ;;  %v672_v53 = vld [vmem:[#allocation3 + $0x2c0] sm:$0xff] }
 0x120   : > { %773 = vmatpush.msra.mxu2 %v682_v44  ;;  %793 = vmatpush.msra.mxu3 %v683_v45  ;;  %v673_v54 = vld [vmem:[#allocation3 + $0x2c8] sm:$0xff]  ;;  %v658_v31 = vld [vmem:[#allocation3 + $0x250] sm:$0xff]  ;;  %v659_v55 = vld [vmem:[#allocation3 + $0x258] sm:$0xff] }
 0x121   : > { %733 = vmatpush.msra.mxu0 %v680_v49  ;;  %753 = vmatpush.msra.mxu1 %v681_v27  ;;  %v664_v57 = vld [vmem:[#allocation3 + $0x280] sm:$0xff]  ;;  %v665_v39 = vld [vmem:[#allocation3 + $0x288] sm:$0xff]  ;;  %v650_v58 = vld [vmem:[#allocation3 + $0x210] sm:$0xff] }
 0x122   : > { %774 = vmatpush.msra.mxu2 %v674_v47  ;;  %794 = vmatpush.msra.mxu3 %v675_v48  ;;  %v651_v59 = vld [vmem:[#allocation3 + $0x218] sm:$0xff]  ;;  %v656_v56 = vld [vmem:[#allocation3 + $0x240] sm:$0xff]  ;;  %v657_v60 = vld [vmem:[#allocation3 + $0x248] sm:$0xff] }
 0x123   : > { %734 = vmatpush.msra.mxu0 %v672_v53  ;;  %754 = vmatpush.msra.mxu1 %v673_v54  ;;  %v642_v61 = vld [vmem:[#allocation3 + $0x1d0] sm:$0xff]  ;;  %v643_v62 = vld [vmem:[#allocation3 + $0x1d8] sm:$0xff]  ;;  %v648_v63 = vld [vmem:[#allocation3 + $0x200] sm:$0xff] }
 0x124   : > { %775 = vmatpush.msra.mxu2 %v666_v51  ;;  %795 = vmatpush.msra.mxu3 %v667_v52  ;;  %v649_v0 = vld [vmem:[#allocation3 + $0x208] sm:$0xff]  ;;  %v634_v1 = vld [vmem:[#allocation3 + $0x190] sm:$0xff]  ;;  %v635_v2 = vld [vmem:[#allocation3 + $0x198] sm:$0xff] }
 0x125   : > { %735 = vmatpush.msra.mxu0 %v664_v57  ;;  %755 = vmatpush.msra.mxu1 %v665_v39  ;;  %v640_v4 = vld [vmem:[#allocation3 + $0x1c0] sm:$0xff]  ;;  %v641_v5 = vld [vmem:[#allocation3 + $0x1c8] sm:$0xff]  ;;  %v626_v6 = vld [vmem:[#allocation3 + $0x150] sm:$0xff] }
 0x126   : > { %776 = vmatpush.msra.mxu2 %v658_v31  ;;  %796 = vmatpush.msra.mxu3 %v659_v55  ;;  %v627_v29 = vld [vmem:[#allocation3 + $0x158] sm:$0xff]  ;;  %v632_v7 = vld [vmem:[#allocation3 + $0x180] sm:$0xff]  ;;  %v633_v8 = vld [vmem:[#allocation3 + $0x188] sm:$0xff] }
 0x127   : > { %736 = vmatpush.msra.mxu0 %v656_v56  ;;  %756 = vmatpush.msra.mxu1 %v657_v60  ;;  %v618_v9 = vld [vmem:[#allocation3 + $0x110] sm:$0xff]  ;;  %v619_v10 = vld [vmem:[#allocation3 + $0x118] sm:$0xff]  ;;  %v624_v35 = vld [vmem:[#allocation3 + $0x140] sm:$0xff] }
 0x128   : > { %777 = vmatpush.msra.mxu2 %v650_v58  ;;  %797 = vmatpush.msra.mxu3 %v651_v59  ;;  %v625_v11 = vld [vmem:[#allocation3 + $0x148] sm:$0xff]  ;;  %v610_v12 = vld [vmem:[#allocation3 + $0xd0] sm:$0xff]  ;;  %v611_v13 = vld [vmem:[#allocation3 + $0xd8] sm:$0xff] }
 0x129   : > { %737 = vmatpush.msra.mxu0 %v648_v63  ;;  %757 = vmatpush.msra.mxu1 %v649_v0  ;;  %v616_v14 = vld [vmem:[#allocation3 + $0x100] sm:$0xff]  ;;  %v617_v50 = vld [vmem:[#allocation3 + $0x108] sm:$0xff]  ;;  %v602_v15 = vld [vmem:[#allocation3 + $0x90] sm:$0xff] }
 0x12a   : > { %778 = vmatpush.msra.mxu2 %v642_v61  ;;  %798 = vmatpush.msra.mxu3 %v643_v62  ;;  %v603_v16 = vld [vmem:[#allocation3 + $0x98] sm:$0xff]  ;;  %v608_v3 = vld [vmem:[#allocation3 + $0xc0] sm:$0xff]  ;;  %v609_v17 = vld [vmem:[#allocation3 + $0xc8] sm:$0xff] }
 0x12b   : > { %738 = vmatpush.msra.mxu0 %v640_v4  ;;  %758 = vmatpush.msra.mxu1 %v641_v5  ;;  %v594_v18 = vld [vmem:[#allocation3 + $0x50] sm:$0xff]  ;;  %v595_v19 = vld [vmem:[#allocation3 + $0x58] sm:$0xff]  ;;  %v600_v20 = vld [vmem:[#allocation3 + $0x80] sm:$0xff] }
 0x12c   : > { %779 = vmatpush.msra.mxu2 %v634_v1  ;;  %799 = vmatpush.msra.mxu3 %v635_v2  ;;  %v601_v21 = vld [vmem:[#allocation3 + $0x88] sm:$0xff]  ;;  %v586_v22 = vld [vmem:[#allocation3 + $0x10] sm:$0xff]  ;;  %v587_v24 = vld [vmem:[#allocation3 + $0x18] sm:$0xff] }
 0x12d   : > { %739 = vmatpush.msra.mxu0 %v632_v7  ;;  %759 = vmatpush.msra.mxu1 %v633_v8  ;;  %v710_v25 = vld [vmem:[#allocation3 + $0x3f0] sm:$0xff]  ;;  %v711_v26 = vld [vmem:[#allocation3 + $0x3f8] sm:$0xff]  ;;  %v592_v28 = vld [vmem:[#allocation3 + $0x40] sm:$0xff] }
 0x12e   : > { %780 = vmatpush.msra.mxu2 %v626_v6  ;;  %800 = vmatpush.msra.mxu3 %v627_v29  ;;  %v593_v30 = vld [vmem:[#allocation3 + $0x48] sm:$0xff]  ;;  %v702_v32 = vld [vmem:[#allocation3 + $0x3b0] sm:$0xff]  ;;  %v703_v34 = vld [vmem:[#allocation3 + $0x3b8] sm:$0xff] }
 0x12f   : > { %740 = vmatpush.msra.mxu0 %v624_v35  ;;  %760 = vmatpush.msra.mxu1 %v625_v11  ;;  %v584_v33 = vld [vmem:[#allocation3] sm:$0xff]  ;;  %v585_v36 = vld [vmem:[#allocation3 + $0x8] sm:$0xff]  ;;  %v694_v37 = vld [vmem:[#allocation3 + $0x370] sm:$0xff] }
 0x130   : > { %781 = vmatpush.msra.mxu2 %v618_v9  ;;  %801 = vmatpush.msra.mxu3 %v619_v10  ;;  %v695_v38 = vld [vmem:[#allocation3 + $0x378] sm:$0xff]  ;;  %v708_v40 = vld [vmem:[#allocation3 + $0x3e0] sm:$0xff]  ;;  %v709_v41 = vld [vmem:[#allocation3 + $0x3e8] sm:$0xff] }
 0x131   : > { %741 = vmatpush.msra.mxu0 %v616_v14  ;;  %761 = vmatpush.msra.mxu1 %v617_v50  ;;  %v686_v42 = vld [vmem:[#allocation3 + $0x330] sm:$0xff]  ;;  %v687_v43 = vld [vmem:[#allocation3 + $0x338] sm:$0xff]  ;;  %v700_v44 = vld [vmem:[#allocation3 + $0x3a0] sm:$0xff] }
 0x132   : > { %782 = vmatpush.msra.mxu2 %v610_v12  ;;  %802 = vmatpush.msra.mxu3 %v611_v13  ;;  %v701_v45 = vld [vmem:[#allocation3 + $0x3a8] sm:$0xff]  ;;  %v678_v46 = vld [vmem:[#allocation3 + $0x2f0] sm:$0xff]  ;;  %v679_v23 = vld [vmem:[#allocation3 + $0x2f8] sm:$0xff] }
 0x133   : > { %742 = vmatpush.msra.mxu0 %v608_v3  ;;  %762 = vmatpush.msra.mxu1 %v609_v17  ;;  %v692_v47 = vld [vmem:[#allocation3 + $0x360] sm:$0xff]  ;;  %v693_v48 = vld [vmem:[#allocation3 + $0x368] sm:$0xff]  ;;  %v670_v49 = vld [vmem:[#allocation3 + $0x2b0] sm:$0xff] }
 0x134   : > { %783 = vmatpush.msra.mxu2 %v602_v15  ;;  %803 = vmatpush.msra.mxu3 %v603_v16  ;;  %v671_v27 = vld [vmem:[#allocation3 + $0x2b8] sm:$0xff]  ;;  %v684_v51 = vld [vmem:[#allocation3 + $0x320] sm:$0xff]  ;;  %v685_v52 = vld [vmem:[#allocation3 + $0x328] sm:$0xff] }
 0x135   : > { %743 = vmatpush.msra.mxu0 %v600_v20  ;;  %763 = vmatpush.msra.mxu1 %v601_v21  ;;  %v662_v53 = vld [vmem:[#allocation3 + $0x270] sm:$0xff]  ;;  %v663_v54 = vld [vmem:[#allocation3 + $0x278] sm:$0xff]  ;;  %v676_v31 = vld [vmem:[#allocation3 + $0x2e0] sm:$0xff] }
 0x136   : > { %784 = vmatpush.msra.mxu2 %v594_v18  ;;  %804 = vmatpush.msra.mxu3 %v595_v19  ;;  %v677_v55 = vld [vmem:[#allocation3 + $0x2e8] sm:$0xff]  ;;  %v654_v57 = vld [vmem:[#allocation3 + $0x230] sm:$0xff]  ;;  %v655_v39 = vld [vmem:[#allocation3 + $0x238] sm:$0xff] }
 0x137   : > { %744 = vmatpush.msra.mxu0 %v592_v28  ;;  %764 = vmatpush.msra.mxu1 %v593_v30  ;;  %v668_v58 = vld [vmem:[#allocation3 + $0x2a0] sm:$0xff]  ;;  %v669_v59 = vld [vmem:[#allocation3 + $0x2a8] sm:$0xff]  ;;  %v646_v56 = vld [vmem:[#allocation3 + $0x1f0] sm:$0xff] }
 0x138   : > { %785 = vmatpush.msra.mxu2 %v586_v22  ;;  %805 = vmatpush.msra.mxu3 %v587_v24  ;;  %v647_v60 = vld [vmem:[#allocation3 + $0x1f8] sm:$0xff]  ;;  %v660_v61 = vld [vmem:[#allocation3 + $0x260] sm:$0xff]  ;;  %v661_v62 = vld [vmem:[#allocation3 + $0x268] sm:$0xff] }
 0x139   : > { %745 = vmatpush.msra.mxu0 %v584_v33  ;;  %765 = vmatpush.msra.mxu1 %v585_v36  ;;  %v582_v63 = vld [vmem:[#allocation2] sm:$0x1]  ;;  %v638_v0 = vld [vmem:[#allocation3 + $0x1b0] sm:$0xff]  ;;  %v652_v2 = vld [vmem:[#allocation3 + $0x220] sm:$0xff] }
 0x13a   : > { %850 = vmatpush.msrb.mxu2 %v710_v25  ;;  %870 = vmatpush.msrb.mxu3 %v711_v26  ;;  %v639_v1 = vld [vmem:[#allocation3 + $0x1b8] sm:$0xff]  ;;  %v653_v4 = vld [vmem:[#allocation3 + $0x228] sm:$0xff]  ;;  %v630_v5 = vld [vmem:[#allocation3 + $0x170] sm:$0xff]  ;;  %v1363_v29 = vmul.f32 0.0009765625, %v582_v63 }
 0x13b   : > { %810 = vmatpush.msrb.mxu0 %v708_v40  ;;  %830 = vmatpush.msrb.mxu1 %v709_v41  ;;  %v631_v6 = vld [vmem:[#allocation3 + $0x178] sm:$0xff]  ;;  %v644_v7 = vld [vmem:[#allocation3 + $0x1e0] sm:$0xff]  ;;  %v645_v8 = vld [vmem:[#allocation3 + $0x1e8] sm:$0xff] }
 0x13c   : > { %851 = vmatpush.msrb.mxu2 %v702_v32  ;;  %871 = vmatpush.msrb.mxu3 %v703_v34  ;;  %v622_v9 = vld [vmem:[#allocation3 + $0x130] sm:$0xff]  ;;  %v623_v10 = vld [vmem:[#allocation3 + $0x138] sm:$0xff]  ;;  %v636_v35 = vld [vmem:[#allocation3 + $0x1a0] sm:$0xff] }
 0x13d   : > { %811 = vmatpush.msrb.mxu0 %v700_v44  ;;  %831 = vmatpush.msrb.mxu1 %v701_v45  ;;  %v637_v11 = vld [vmem:[#allocation3 + $0x1a8] sm:$0xff]  ;;  %v614_v12 = vld [vmem:[#allocation3 + $0xf0] sm:$0xff]  ;;  %v615_v13 = vld [vmem:[#allocation3 + $0xf8] sm:$0xff] }
 0x13e   : > { %852 = vmatpush.msrb.mxu2 %v694_v37  ;;  %872 = vmatpush.msrb.mxu3 %v695_v38  ;;  %v628_v14 = vld [vmem:[#allocation3 + $0x160] sm:$0xff]  ;;  %v629_v50 = vld [vmem:[#allocation3 + $0x168] sm:$0xff]  ;;  %v606_v15 = vld [vmem:[#allocation3 + $0xb0] sm:$0xff] }
 0x13f   : > { %812 = vmatpush.msrb.mxu0 %v692_v47  ;;  %832 = vmatpush.msrb.mxu1 %v693_v48  ;;  %v607_v16 = vld [vmem:[#allocation3 + $0xb8] sm:$0xff]  ;;  %v620_v3 = vld [vmem:[#allocation3 + $0x120] sm:$0xff]  ;;  %v621_v17 = vld [vmem:[#allocation3 + $0x128] sm:$0xff] }
 0x140   : > { %853 = vmatpush.msrb.mxu2 %v686_v42  ;;  %873 = vmatpush.msrb.mxu3 %v687_v43  ;;  %v598_v18 = vld [vmem:[#allocation3 + $0x70] sm:$0xff]  ;;  %v599_v19 = vld [vmem:[#allocation3 + $0x78] sm:$0xff]  ;;  %v612_v20 = vld [vmem:[#allocation3 + $0xe0] sm:$0xff] }
 0x141   : > { %813 = vmatpush.msrb.mxu0 %v684_v51  ;;  %833 = vmatpush.msrb.mxu1 %v685_v52  ;;  %v613_v21 = vld [vmem:[#allocation3 + $0xe8] sm:$0xff]  ;;  %v590_v22 = vld [vmem:[#allocation3 + $0x30] sm:$0xff]  ;;  %v591_v24 = vld [vmem:[#allocation3 + $0x38] sm:$0xff] }
 0x142   : > { %854 = vmatpush.msrb.mxu2 %v678_v46  ;;  %874 = vmatpush.msrb.mxu3 %v679_v23  ;;  %v604_v25 = vld [vmem:[#allocation3 + $0xa0] sm:$0xff]  ;;  %v605_v26 = vld [vmem:[#allocation3 + $0xa8] sm:$0xff] }
 0x143   : > { %814 = vmatpush.msrb.mxu0 %v676_v31  ;;  %834 = vmatpush.msrb.mxu1 %v677_v55  ;;  %v596_v28 = vld [vmem:[#allocation3 + $0x60] sm:$0xff]  ;;  %v597_v30 = vld [vmem:[#allocation3 + $0x68] sm:$0xff] }
 0x144   : > { %855 = vmatpush.msrb.mxu2 %v670_v49  ;;  %875 = vmatpush.msrb.mxu3 %v671_v27  ;;  %v588_v32 = vld [vmem:[#allocation3 + $0x20] sm:$0xff]  ;;  %v589_v34 = vld [vmem:[#allocation3 + $0x28] sm:$0xff] }
 0x145   : > { %815 = vmatpush.msrb.mxu0 %v668_v58  ;;  %835 = vmatpush.msrb.mxu1 %v669_v59  ;;  %v712_v33 = vld [vmem:[%s1387_s4] sm:$0xff] }
 0x146   : > { %856 = vmatpush.msrb.mxu2 %v662_v53  ;;  %876 = vmatpush.msrb.mxu3 %v663_v54  ;;  %v715_v37 = vperm.slane %v712_v33, 1  ;;  %v716_v40 = vperm.slane %v712_v33, 2  ;;  %v717_v41 = vperm.slane %v712_v33, 3  ;;  %v714_v23 = vperm.slane %v712_v33, 0 }
 0x147   : > { %816 = vmatpush.msrb.mxu0 %v660_v61  ;;  %836 = vmatpush.msrb.mxu1 %v661_v62  ;;  %v718_v47 = vperm.slane %v712_v33, 4  ;;  %v719_v48 = vperm.slane %v712_v33, 5  ;;  %v720_v49 = vperm.slane %v712_v33, 6  ;;  %v721_v27 = vperm.slane %v712_v33, 7 }
 0x148   : > { %857 = vmatpush.msrb.mxu2 %v654_v57  ;;  %877 = vmatpush.msrb.mxu3 %v655_v39 }
 0x149   : > { %817 = vmatpush.msrb.mxu0 %v652_v2  ;;  %837 = vmatpush.msrb.mxu1 %v653_v4 }
 0x14a   : > { %858 = vmatpush.msrb.mxu2 %v646_v56  ;;  %878 = vmatpush.msrb.mxu3 %v647_v60 }
 0x14b   : > { %786 = vmatmul.f32.vlgmr.msra.gmra.mxu2 %v1363_v29  ;;  %806 = vmatmul.f32.vlgmr.msra.gmra.mxu3 %v1363_v29 }
 0x14c   : > { %859 = vmatpush.msrb.mxu2 %v638_v0  ;;  %879 = vmatpush.msrb.mxu3 %v639_v1 }
 0x14d   : > { %818 = vmatpush.msrb.mxu0 %v644_v7  ;;  %838 = vmatpush.msrb.mxu1 %v645_v8 }
 0x14e   : > { %860 = vmatpush.msrb.mxu2 %v630_v5  ;;  %880 = vmatpush.msrb.mxu3 %v631_v6 }
 0x14f   : > { %819 = vmatpush.msrb.mxu0 %v636_v35  ;;  %839 = vmatpush.msrb.mxu1 %v637_v11 }
 0x150   : > { %861 = vmatpush.msrb.mxu2 %v622_v9  ;;  %881 = vmatpush.msrb.mxu3 %v623_v10 }
 0x151   : > { %820 = vmatpush.msrb.mxu0 %v628_v14  ;;  %840 = vmatpush.msrb.mxu1 %v629_v50 }
 0x152   : > { %862 = vmatpush.msrb.mxu2 %v614_v12  ;;  %882 = vmatpush.msrb.mxu3 %v615_v13 }
 0x153   : > { %766 = vmatmul.f32.vlgmr.msra.gmra.mxu1 %v1363_v29  ;;  %821 = vmatpush.msrb.mxu0 %v620_v3 }
 0x154   : > { %863 = vmatpush.msrb.mxu2 %v606_v15  ;;  %883 = vmatpush.msrb.mxu3 %v607_v16 }
 0x155   : > { %841 = vmatpush.msrb.mxu1 %v621_v17  ;;  %746 = vmatmul.f32.vlgmr.msra.gmra.mxu0 %v1363_v29 }
 0x156   : > { %864 = vmatpush.msrb.mxu2 %v598_v18  ;;  %884 = vmatpush.msrb.mxu3 %v599_v19 }
 0x157   : > { %822 = vmatpush.msrb.mxu0 %v612_v20  ;;  %842 = vmatpush.msrb.mxu1 %v613_v21 }
 0x158   : > { %865 = vmatpush.msrb.mxu2 %v590_v22  ;;  %885 = vmatpush.msrb.mxu3 %v591_v24 }
 0x159   : > { %866 = vmatmul.f32.vlgmr.msrb.gmra.mxu2 %v1363_v29  ;;  %886 = vmatmul.f32.vlgmr.msrb.gmra.mxu3 %v1363_v29 }
 0x15a   : > { %823 = vmatpush.msrb.mxu0 %v604_v25  ;;  %843 = vmatpush.msrb.mxu1 %v605_v26 }
 0x15c   : > { %824 = vmatpush.msrb.mxu0 %v596_v28  ;;  %844 = vmatpush.msrb.mxu1 %v597_v30 }
 0x15e   : > { %825 = vmatpush.msrb.mxu0 %v588_v32  ;;  %845 = vmatpush.msrb.mxu1 %v589_v34 }
 0x15f   : > { %826 = vmatmul.f32.vlgmr.msrb.gmra.mxu0 %v1363_v29  ;;  %846 = vmatmul.f32.vlgmr.msrb.gmra.mxu1 %v1363_v29 }
 0x1ce   : > { %v787_v42 = vpop.f32.mrf.mxu2  ;;  %v807_v43 = vpop.f32.mrf.mxu3 }
 0x1cf   : > { %v788_v45 = vadd.f32 %v787_v42, %v716_v40  ;;  %v808_v46 = vadd.f32 %v807_v43, %v717_v41 }
 0x1d0   : > { %v767_v38 = vpop.f32.mrf.mxu1 }
 0x1d1   : > { %v768_v44 = vadd.f32 %v767_v38, %v715_v37  ;;  %v899_v52 = vrot.slane %v788_v45, 6  ;;  %v900_v53 = vrot.slane %v808_v46, 5 }
 0x1d2   : > { %v747_v36 = vpop.f32.mrf.mxu0 }
 0x1d3   : > { %v898_v51 = vrot.slane %v768_v44, 7  ;;  %v748_v54 = vadd.f32 %v747_v36, %v714_v23  ;;  %v908_v63 = vsel %vm907_vm1, %v899_v52, %v900_v53 }
 0x1d5   : > { %v906_v0 = vsel %vm905_vm2, %v748_v54, %v898_v51 }
 0x1d6   : > { %v910_v6 = vsel %vm909_vm3, %v906_v0, %v908_v63 }
 0x1dc   : > { %v827_v31 = vpop.f32.mrf.mxu0  ;;  %v847_v55 = vpop.f32.mrf.mxu1 }
 0x1dd   : > { %v828_v57 = vadd.f32 %v827_v31, %v718_v47  ;;  %v848_v39 = vadd.f32 %v847_v55, %v719_v48  ;;  %v867_v58 = vpop.f32.mrf.mxu2  ;;  %v887_v59 = vpop.f32.mrf.mxu3 }
 0x1de   : > { %v868_v56 = vadd.f32 %v867_v58, %v720_v49  ;;  %v888_v60 = vadd.f32 %v887_v59, %v721_v27 }
 0x1df   : > { %v901_v61 = vrot.slane %v828_v57, 4  ;;  %v902_v62 = vrot.slane %v848_v39, 3 }
 0x1e0   : > { %v903_v1 = vrot.slane %v868_v56, 2  ;;  %v904_v2 = vrot.slane %v888_v60, 1 }
 0x1e1   : > { %v912_v4 = vsel %vm911_vm4, %v901_v61, %v902_v62 }
 0x1e2   : > { %v914_v5 = vsel %vm913_vm5, %v903_v1, %v904_v2 }
 0x1e3   : > { %v916_v29 = vsel %vm915_vm6, %v912_v4, %v914_v5 }
 0x1e4   : > { %v918_v7 = vsel %vm917_vm7, %v910_v6, %v916_v29 }
 0x1e5   : > { %920 = vst [vmem:[#allocation6] sm:$0xff] %v918_v7 }
 0x1e6 PF: > { %p1121_p9 = scmp.eq.s32.totalorder %s1255_s22, 3  ;;  %s1215_s15 = smov [#allocation6]  }
 0x1e7   : > { %s927_s16 = sshll.u32 %s1215_s15, 4  ;;  %s929_s20 = sshll.u32 %s1388_s5, 4  ;;  %s928_s16 = int_to_ptr.vmem [resolvable:$true] %s927_s16  ;;  %s930_s20 = int_to_ptr.hbm [resolvable:$true] %s929_s20 }
 0x1e8   : > { %1112 = dma.vmem_to_hbm [thread:$0]  (%p1121_p9), %s928_s16, 128, %s930_s20, [#allocation5]  }
 0x1e9   : > { %1204 = dma.done.wait (%p1121_p9), [#allocation5], 128  }
 0x1ea   : > { %1206 = vsyncadd (%p1121_p9), [#allocation5], 4294967168 }
 0x1eb PF: > { %s17_s18 = sadd.s32 1, %s1209_s18  }
 0x1ec   : > { %p14_p10 = scmp.ge.s32.totalorder %s17_s18, 6  }
 0x1ee   :  { %16 = sbr.rel (!%p14_p10) target bundleno = 2 (0x2), region = 80 }
 0x1f3   :  { %943 = vsyncpa [#allocation4], 1 }
 0x1f4   :  { %945 = vsyncpa [#allocation4 + $0x1], 1 }
 0x1f5   :  { %946 = vsyncpa [#allocation5], 1 }
 0x1f6   :  { %948 = vsyncpa [#allocation5 + $0x1], 1 }

</bundles_post_ra>
